<compile_context>
chip_gen: v7x
topology: tpu7x:2x2x1
jax: 0.10.0
libtpu: 0.0.40
codegen_flags: <defaults>
</compile_context>

<pallas_src>
import jax
import jax.numpy as jnp
from jax.experimental import pallas as pl
from jax.experimental.pallas import tpu as pltpu

_LANES = 128                        # vreg lane width; stored last dim is lane-dense
_MAX_TILE_BYTES = 2 * 1024 * 1024   # 2 MiB/block -> 8 MiB total w/ double-buffered in+out


def _cotanh_kernel(x_ref, o_ref):
    x = x_ref[...]
    # NOTE(v7x): jnp.tanh should lower to the single EUP tanh instruction
    # (one EUP push per vreg). If a bundle dump ever shows an exp/recip
    # decomposition, switch to the direct EUP path so the 3.2 TB/s roofline
    # does not flip this kernel EUP-bound.
    o_ref[...] = jnp.tanh(x) + x


def cotanh_forward(x):
    """Elementwise tanh(x) + x via a lane-dense tiled Pallas kernel."""
    orig_shape = x.shape
    orig_dtype = x.dtype
    itemsize = jnp.dtype(orig_dtype).itemsize

    flat = x.reshape(-1)            # contiguous row-major -> bitcast, no HBM copy
    size = flat.shape[0]

    # Dtype-aware packed-sublane granularity: 8 (4B), 16 (2B), 32 (1B).
    sublanes = max(8, 32 // itemsize)

    pad = (-size) % _LANES
    if pad:
        # TODO(synk): replace this pad+slice fallback (extra HBM passes) with
        # in-kernel tail masking for element counts not divisible by 128.
        flat = jnp.pad(flat, (0, pad))
    rows = flat.shape[0] // _LANES
    x2d = flat.reshape(rows, _LANES)

    # Tile rows: as big as the byte budget allows, rounded to the packed
    # sublane granularity. Small inputs run as one full-array block (a block
    # equal to the full array dims is always legal regardless of divisibility).
    max_tile_rows = max(
        sublanes,
        (_MAX_TILE_BYTES // (_LANES * itemsize)) // sublanes * sublanes,
    )
    tile_rows = rows if rows <= max_tile_rows else max_tile_rows
    grid = (pl.cdiv(rows, tile_rows),)   # ragged last block handled by Pallas

    out2d = pl.pallas_call(
        _cotanh_kernel,
        out_shape=jax.ShapeDtypeStruct((rows, _LANES), orig_dtype),
        grid_spec=pltpu.PrefetchScalarGridSpec(
            num_scalar_prefetch=0,
            grid=grid,
            in_specs=[pl.BlockSpec((tile_rows, _LANES), lambda i: (i, 0))],
            out_specs=pl.BlockSpec((tile_rows, _LANES), lambda i: (i, 0)),
        ),
        compiler_params=pltpu.CompilerParams(
            dimension_semantics=("parallel",)),
        cost_estimate=pl.CostEstimate(
            flops=size,
            transcendentals=size,
            bytes_accessed=2 * size * itemsize),
    )(x2d)

    out_flat = out2d.reshape(-1)
    if pad:
        out_flat = out_flat[:size]
    return out_flat.reshape(orig_shape)


def _reference(x):
    return jnp.tanh(x) + x


if __name__ == "__main__":
    key = jax.random.PRNGKey(0)

    N, C, H, W = 2, 4, 16, 16
    x = jax.random.normal(key, (N, C, H, W), dtype=jnp.float32)

    out = cotanh_forward(x)
    out = jax.block_until_ready(out)

    ref = _reference(x)
    assert out.shape == x.shape
    assert out.dtype == x.dtype
    assert jnp.max(jnp.abs(out - ref)) < 1e-5

    print("KERNEL_OK")
</pallas_src>

<mosaic_0001>
module attributes {stable_mosaic.version = 11 : i64} {
  func.func @_cotanh_kernel(%arg0: i32, %arg1: memref<16x128xf32, #tpu.memory_space<vmem>>, %arg2: memref<16x128xf32, #tpu.memory_space<vmem>>) attributes {dimension_semantics = [#tpu.dimension_semantics<parallel>], iteration_bounds = array<i64: 1>, scalar_prefetch = 0 : i64, scratch_operands = 0 : i64, tpu.core_type = #tpu.core_type<tc>, window_params = [{transform_indices = @transform_0, window_bounds = array<i64: 16, 128>}, {transform_indices = @transform_1, window_bounds = array<i64: 16, 128>}]} {
    %c0 = arith.constant 0 : index
    %c0_0 = arith.constant 0 : index
    %0 = vector.load %arg1[%c0, %c0_0] : memref<16x128xf32, #tpu.memory_space<vmem>>, vector<16x128xf32>
    %1 = math.tanh %0 : vector<16x128xf32>
    %2 = arith.addf %1, %0 : vector<16x128xf32>
    %c0_1 = arith.constant 0 : index
    %c0_2 = arith.constant 0 : index
    %3 = vector.load %arg2[%c0_1, %c0_2] : memref<16x128xf32, #tpu.memory_space<vmem>>, vector<16x128xf32>
    tpu.vector_store %arg2[%c0_1, %c0_2], %2 {strides = array<i32>} : memref<16x128xf32, #tpu.memory_space<vmem>>, vector<16x128xf32>,
    return
  }
  func.func @transform_0(%arg0: i32) -> (i32, i32) {
    %c0_i32 = arith.constant 0 : i32
    %c0_i32_0 = arith.constant 0 : i32
    return %arg0, %c0_i32 : i32, i32
  }
  func.func @transform_1(%arg0: i32) -> (i32, i32) {
    %c0_i32 = arith.constant 0 : i32
    %c0_i32_0 = arith.constant 0 : i32
    return %arg0, %c0_i32 : i32, i32
  }
}

</mosaic_0001>

<bundles_post_ra>
// kernel: tpu_custom_call.1
= control target key start
LH: loop header
LB: loop body
LE: loop exit
PB: predicated region body
PF: predicated region fallthrough
CT: control target
= control target key end

     0   :  { %6 = vsyncpa [#allocation3], 0  ;;  %s148_s0 = inlined_call_operand.hbm [shape: f32[16,128], index: 0, kind: input, shape index: {}]   ;;  %s149_s1 = inlined_call_operand.hbm [shape: f32[16,128], index: 1, kind: output, shape index: {}]  }
   0x1   :  { %7 = vsyncpa [#allocation4], 0  ;;  %s104_s6 = smov [#allocation2]   ;;  %s56_s10 = scalar_lea.hbm %s148_s0, 256 }
   0x2   :  { %s13_s7 = sshll.u32 %s104_s6, 4  ;;  %p57_p0 = scmp.ne.s32.totalorder %s148_s0, %s56_s10  ;;  %s14_s7 = int_to_ptr.vmem [resolvable:$true] %s13_s7 }
   0x3   :  { %p60_p1 = scmp.lt.u32.totalorder %s56_s10, %s148_s0 }
   0x5   :  { %p62_p2 = pnand %p60_p1, %p57_p0 }
   0x7   :  { %65 = shalt.err (!%p62_p2)
}
   0x8   :  { %s66_s15 = scalar_lea.vmem %s14_s7, 256  ;;  %p71_p4 = scmp.lt.s32.totalorder %s14_s7, %s14_s7 }
   0x9   :  { %p67_p3 = scmp.ne.s32.totalorder %s14_s7, %s66_s15  ;;  %p72_p5 = scmp.lt.s32.totalorder %s66_s15, %s66_s15 }
   0xb   :  { %p73_p6 = por %p72_p5, %p71_p4 }
   0xd   :  { %p74_p7 = pnand %p73_p6, %p67_p3 }
   0xf   :  { %77 = shalt.err (!%p74_p7)
}
  0x10   :  { %s105_s16 = smov 128   ;;  %s106_s17 = smov 8  }
  0x11   :  { %19 = dma.hbm_to_vmem [thread:$0]  %s148_s0, 256, %s14_s7, [#allocation3], %s105_s16, %s105_s16, %s106_s17  }
  0x12   :  { %100 = dma.done.wait [#allocation3], 256  }
  0x13   :  { %101 = vsyncadd [#allocation3], 4294967040  ;;  %v23_v0 = vld [vmem:[#allocation2] sm:$0xff]  ;;  %v24_v1 = vld [vmem:[#allocation2 + $0x8] sm:$0xff]  ;;  %s107_s20 = smov [#allocation5]  }
  0x14   :  { %52 = vtanh.f32 %v23_v0  ;;  %s36_s21 = sshll.u32 %s107_s20, 4  ;;  %s37_s21 = int_to_ptr.vmem [resolvable:$true] %s36_s21 }
  0x15   :  { %54 = vtanh.f32 %v24_v1  ;;  %s78_s22 = scalar_lea.vmem %s37_s21, 256  ;;  %p83_p9 = scmp.lt.s32.totalorder %s37_s21, %s37_s21 }
  0x16   :  { %p79_p8 = scmp.ne.s32.totalorder %s37_s21, %s78_s22  ;;  %p84_p10 = scmp.lt.s32.totalorder %s78_s22, %s78_s22 }
  0x18   :  { %p85_p11 = por %p84_p10, %p83_p9 }
  0x1a   :  { %p86_p12 = pnand %p85_p11, %p79_p8 }
  0x1e   :  { %v53_v2 = vpop.eup %52 }
  0x1f   :  { %v55_v3 = vpop.eup %54  ;;  %v27_v4 = vadd.f32 %v53_v2, %v23_v0 }
  0x20   :  { %v28_v5 = vadd.f32 %v55_v3, %v24_v1 }
  0x21   :  { %29 = vst [vmem:[#allocation5] sm:$0xff] %v27_v4 }
  0x22   :  { %30 = vst [vmem:[#allocation5 + $0x8] sm:$0xff] %v28_v5 }
  0x23   :  { %89 = shalt.err (!%p86_p12)
}
  0x24   :  { %s90_s24 = scalar_lea.hbm %s149_s1, 256 }
  0x25   :  { %p91_p13 = scmp.ne.s32.totalorder %s149_s1, %s90_s24  ;;  %p94_p0 = scmp.lt.u32.totalorder %s90_s24, %s149_s1 }
  0x27   :  { %p96_p1 = pnand %p94_p0, %p91_p13 }
  0x29   :  { %99 = shalt.err (!%p96_p1)
}
  0x2a   :  { %42 = dma.vmem_to_hbm [thread:$0]  %s37_s21, 256, %s149_s1, [#allocation4], %s105_s16, %s105_s16, %s106_s17  }
  0x2b   :  { %102 = dma.done.wait [#allocation4], 256  }
  0x2c   :  { %103 = vsyncadd [#allocation4], 4294967040 }
  0x2d   :  { %46 = vsyncpa [#allocation3], 1 }
  0x2e   :  { %47 = vsyncpa [#allocation4], 1 }

</bundles_post_ra>
